<compile_context>
chip_gen: v5e
topology: v5e:2x2
jax: 0.10.0
libtpu: 0.0.40
codegen_flags: <defaults>
</compile_context>

<pallas_src>
import jax
import jax.numpy as jnp
from jax.experimental import pallas as pl
from jax.experimental.pallas import tpu as pltpu


# ---------------- fused kernel ----------------

def _fused_norm_kernel(x_ref, y_ref, z_ref, frob_ref, l2_ref, l1_ref):
    # Frobenius norm of the whole (lane-dense) x tile -> scalar in SMEM.
    xv = x_ref[...].astype(jnp.float32)
    frob_ref[0, 0] = jnp.sqrt(jnp.sum(xv * xv))

    # L2 over the lane axis of (NC, HW); write lane-dense (1, NC).
    yv = y_ref[...].astype(jnp.float32)
    row_ssq = jnp.sum(yv * yv, axis=1)               # (NC,)
    l2_ref[...] = jnp.sqrt(row_ssq).reshape(1, -1)   # (1, NC)

    # L1 down the sublane axis of (H, NCW); lane-dense (1, NCW) output.
    zv = z_ref[...].astype(jnp.float32)
    l1_ref[...] = jnp.sum(jnp.abs(zv), axis=0, keepdims=True)


# ---------------- wrapper ----------------

def model_forward(x, y, z):
    """x: any shape; y: (N, C, H, W); z: rank >= 2 (L1 reduce over dim -2)."""
    N, C, H, W = y.shape
    NC, HW = N * C, H * W

    # --- lane-dense input layouts (wrapper-side reshape/transpose glue) ---
    xs = x.size
    x_flat = x.reshape(xs // 128, 128) if xs % 128 == 0 else x.reshape(1, xs)

    y_flat = y.reshape(NC, HW)                      # dense HW lanes per row

    z_moved = jnp.moveaxis(z, -2, 0)                # (R, ...rest)
    R = z_moved.shape[0]
    rest = 1
    for d in z_moved.shape[1:]:
        rest *= d
    z_slab = z_moved.reshape(R, rest)               # reduce axis on sublanes

    frob, l2_flat, l1_flat = pl.pallas_call(
        _fused_norm_kernel,
        out_shape=(
            jax.ShapeDtypeStruct((1, 1), jnp.float32),     # Frobenius scalar
            jax.ShapeDtypeStruct((1, NC), jnp.float32),    # L2 per (N, C)
            jax.ShapeDtypeStruct((1, rest), jnp.float32),  # L1 per (..., W)
        ),
        in_specs=[
            pl.BlockSpec(memory_space=pltpu.VMEM),
            pl.BlockSpec(memory_space=pltpu.VMEM),
            pl.BlockSpec(memory_space=pltpu.VMEM),
        ],
        out_specs=(
            pl.BlockSpec(memory_space=pltpu.SMEM),
            pl.BlockSpec(memory_space=pltpu.VMEM),
            pl.BlockSpec(memory_space=pltpu.VMEM),
        ),
    )(x_flat, y_flat, z_slab)

    x_out = frob[0, 0]
    y_out = l2_flat.reshape(N, C)
    z_out = l1_flat.reshape(z.shape[:-2] + (1,) + z.shape[-1:])
    return x_out, y_out, z_out


if __name__ == "__main__":
    key = jax.random.PRNGKey(0)
    kx, ky, kz = jax.random.split(key, 3)

    # small shapes consistent with the forward (y needs >= 4 dims, z >= 2)
    x = jax.random.normal(kx, (2, 4, 16, 16), dtype=jnp.float32)
    y = jax.random.normal(ky, (2, 4, 16, 16), dtype=jnp.float32)
    z = jax.random.normal(kz, (2, 4, 16, 16), dtype=jnp.float32)

    fwd = jax.jit(model_forward)
    x_out, y_out, z_out = fwd(x, y, z)
    jax.block_until_ready((x_out, y_out, z_out))

    # sanity check against plain-JAX reference
    x_ref = jnp.sqrt(jnp.sum(x * x))
    y_ref = jnp.sqrt(jnp.sum(y * y, axis=(2, 3)))
    z_ref = jnp.sum(jnp.abs(z), axis=-2, keepdims=True)
    assert jnp.allclose(x_out, x_ref, rtol=1e-5, atol=1e-5)
    assert jnp.allclose(y_out, y_ref, rtol=1e-5, atol=1e-5)
    assert jnp.allclose(z_out, z_ref, rtol=1e-5, atol=1e-5)
    assert y_out.shape == (2, 4) and z_out.shape == (2, 4, 1, 16)

    print("KERNEL_OK")
</pallas_src>

<mosaic_0001>
module attributes {stable_mosaic.version = 11 : i64} {
  func.func @_fused_norm_kernel(%arg0: memref<16x128xf32, #tpu.memory_space<vmem>>, %arg1: memref<8x256xf32, #tpu.memory_space<vmem>>, %arg2: memref<16x128xf32, #tpu.memory_space<vmem>>, %arg3: memref<1x1xf32, #tpu.memory_space<smem>>, %arg4: memref<1x8xf32, #tpu.memory_space<vmem>>, %arg5: memref<1x128xf32, #tpu.memory_space<vmem>>) attributes {dimension_semantics = [], scalar_prefetch = 0 : i64, scratch_operands = 0 : i64, tpu.core_type = #tpu.core_type<tc>} {
    %c0 = arith.constant 0 : index
    %c0_0 = arith.constant 0 : index
    %0 = vector.load %arg0[%c0, %c0_0] : memref<16x128xf32, #tpu.memory_space<vmem>>, vector<16x128xf32>
    %1 = arith.mulf %0, %0 : vector<16x128xf32>
    %2 = vector.shape_cast %1 : vector<16x128xf32> to vector<1x16x128xf32>
    %cst = arith.constant dense<0.000000e+00> : vector<1xf32>
    %3 = vector.multi_reduction <add>, %2, %cst [1, 2] : vector<1x16x128xf32> to vector<1xf32>
    %4 = vector.shape_cast %3 : vector<1xf32> to vector<1x1x1xf32>
    %5 = vector.extract %4[0, 0, 0] : f32 from vector<1x1x1xf32>
    %6 = math.sqrt %5 : f32
    %c0_1 = arith.constant 0 : index
    %c0_2 = arith.constant 0 : index
    %7 = memref.load %arg3[%c0_1, %c0_2] : memref<1x1xf32, #tpu.memory_space<smem>>
    memref.store %6, %arg3[%c0_1, %c0_2] : memref<1x1xf32, #tpu.memory_space<smem>>
    %c0_3 = arith.constant 0 : index
    %c0_4 = arith.constant 0 : index
    %8 = vector.load %arg1[%c0_3, %c0_4] : memref<8x256xf32, #tpu.memory_space<vmem>>, vector<8x256xf32>
    %9 = arith.mulf %8, %8 : vector<8x256xf32>
    %cst_5 = arith.constant dense<0.000000e+00> : vector<8xf32>
    %10 = vector.multi_reduction <add>, %9, %cst_5 [1] : vector<8x256xf32> to vector<8xf32>
    %11 = math.sqrt %10 : vector<8xf32>
    %12 = vector.shape_cast %11 : vector<8xf32> to vector<1x8xf32>
    %c0_6 = arith.constant 0 : index
    %c0_7 = arith.constant 0 : index
    %13 = vector.load %arg4[%c0_6, %c0_7] : memref<1x8xf32, #tpu.memory_space<vmem>>, vector<1x8xf32>
    tpu.vector_store %arg4[%c0_6, %c0_7], %12 {strides = array<i32>} : memref<1x8xf32, #tpu.memory_space<vmem>>, vector<1x8xf32>,
    %c0_8 = arith.constant 0 : index
    %c0_9 = arith.constant 0 : index
    %14 = vector.load %arg2[%c0_8, %c0_9] : memref<16x128xf32, #tpu.memory_space<vmem>>, vector<16x128xf32>
    %15 = math.absf %14 : vector<16x128xf32>
    %cst_10 = arith.constant dense<0.000000e+00> : vector<128xf32>
    %16 = vector.multi_reduction <add>, %15, %cst_10 [0] : vector<16x128xf32> to vector<128xf32>
    %17 = vector.shape_cast %16 : vector<128xf32> to vector<1x128xf32>
    %c0_11 = arith.constant 0 : index
    %c0_12 = arith.constant 0 : index
    %18 = vector.load %arg5[%c0_11, %c0_12] : memref<1x128xf32, #tpu.memory_space<vmem>>, vector<1x128xf32>
    tpu.vector_store %arg5[%c0_11, %c0_12], %17 {strides = array<i32>} : memref<1x128xf32, #tpu.memory_space<vmem>>, vector<1x128xf32>,
    return
  }
}

</mosaic_0001>

<bundles_post_ra>
// kernel: model_forward.1
= control target key start
LH: loop header
LB: loop body
LE: loop exit
PB: predicated region body
PF: predicated region fallthrough
CT: control target
= control target key end

     0   :  { %s190_s0 = inlined_call_operand.vmem [shape: f32[16,128], index: 0, kind: input, shape index: {}]   ;;  %s191_s1 = inlined_call_operand.vmem [shape: f32[8,256], index: 1, kind: input, shape index: {}]   ;;  %s192_s2 = inlined_call_operand.vmem [shape: f32[16,128], index: 2, kind: input, shape index: {}]   ;;  %s193_s3 = inlined_call_operand.hbm [shape: f32[1,1], index: 3, kind: output, shape index: {0}]   ;;  %s194_s4 = inlined_call_operand.vmem [shape: f32[1,8], index: 4, kind: output, shape index: {1}]   ;;  %s195_s5 = inlined_call_operand.vmem [shape: f32[1,128], index: 5, kind: output, shape index: {2}]  }
   0x1   :  { %v18_v0 = vld [vmem:[%s190_s0] sm:$0xff]  ;;  %v19_v1 = vld [vmem:[%s190_s0 + $0x8] sm:$0xff] }
   0x2   :  { %v20_v2 = vmul.f32 %v18_v0, %v18_v0  ;;  %v21_v3 = vmul.f32 %v19_v1, %v19_v1 }
   0x3   :  { %11 = vsyncpa [#allocation3], 0  ;;  %v48_v4 = vld [vmem:[%s191_s1] sm:$0xff]  ;;  %v49_v5 = vld [vmem:[%s191_s1 + $0x8] sm:$0xff]  ;;  %v68_v23 = vlaneseq  ;;  %vm72_vm2 = vcmask 57344   ;;  %s91_s9 = sshll.u32 %s193_s3, 4  ;;  %s92_s9 = int_to_ptr.hbm [resolvable:$true] %s91_s9 }
   0x4   :  { %v22_v6 = vadd.f32 %v21_v3, %v20_v2  ;;  %v50_v7 = vmul.f32 %v48_v4, %v48_v4  ;;  %v51_v8 = vmul.f32 %v49_v5, %v49_v5  ;;  %v74_v42 = vld [vmem:[%s192_s2] sm:$0xff]  ;;  %v75_v43 = vld [vmem:[%s192_s2 + $0x8] sm:$0xff]  ;;  %s132_s2 = smov [#allocation2]  }
   0x5   :  { %v69_v29 = vand.u32 127, %v68_v23  ;;  %v76_v44 = vand.u32 2147483647, %v74_v42  ;;  %v77_v45 = vand.u32 2147483647, %v75_v43 }
   0x6   :  { %23 = vadd.xlane.f32.xlu0 %v22_v6  ;;  %v52_v9 = vadd.f32 %v51_v8, %v50_v7 }
   0x7   :  { %v78_v46 = vadd.f32 %v77_v45, %v76_v44 }
   0x9   :  { %v79_v47 = vrot.slane %v78_v46, 4 }
   0xb   :  { %v80_v48 = vadd.f32 %v79_v47, %v78_v46 }
   0xd   :  { %v81_v49 = vrot.slane %v80_v48, 2 }
   0xe   :  { %53 = vadd.xlane.f32.xlu0 %v52_v9 }
   0xf   :  { %v82_v50 = vadd.f32 %v81_v49, %v80_v48 }
  0x11   :  { %v83_v51 = vrot.slane %v82_v50, 1 }
  0x13   :  { %v84_v52 = vadd.f32 %v83_v51, %v82_v50 }
  0x15   :  { %85 = vst [vmem:[%s195_s5] sm:$0x1] %v84_v52 }
  0x79   :  { %v24_v10 = vpop.xlane.xlu0 %23 }
  0x7a   :  { %v25_v11 = vrot.slane %v24_v10, 4 }
  0x7c   :  { %v26_v12 = vadd.f32 %v25_v11, %v24_v10 }
  0x7e   :  { %v27_v13 = vrot.slane %v26_v12, 2 }
  0x80   :  { %v28_v14 = vadd.f32 %v27_v13, %v26_v12 }
  0x81   :  { %v54_v17 = vpop.xlane.xlu0 %53 }
  0x82   :  { %v29_v15 = vrot.slane %v28_v14, 1  ;;  %114 = vrsqrt.f32 %v54_v17  ;;  %vm62_vm0 = vcmp.eq.f32.partialorder %v54_v17, inf  ;;  %v65_v27 = vand.u32 2147483648, %v54_v17 }
  0x83   :  { %vm64_vm1 = vcmp.eq.f32.partialorder %v54_v17, 0.0 }
  0x84   :  { %v30_v16 = vadd.f32 %v29_v15, %v28_v14 }
  0x86   :  { %109 = vpush %v30_v16 }
  0x88   :  { %v115_v18 = vpop.eup %114 }
  0x89   :  { %v56_v19 = vmul.f32 %v115_v18, %v54_v17 }
  0x8b   :  { %v57_v21 = vmul.f32 %v115_v18, %v56_v19 }
  0x8d   :  { %v58_v22 = vmul.f32 0.5, %v57_v21 }
  0x8f   :  { %v59_v24 = vsub.f32 1.5, %v58_v22 }
  0x91   :  { %v60_v25 = vmul.f32 %v115_v18, %v59_v24 }
  0x93   :  { %v61_v30 = vmul.f32 %v60_v25, %v54_v17 }
  0x95   :  { %v63_v32 = vsel %vm62_vm0, %v54_v17, %v61_v30 }
  0x96   :  { %v66_v33 = vsel %vm64_vm1, %v65_v27, %v63_v32 }
  0x97   :  { %v70_v35 = vperm.slane %v66_v33, %v69_v29 }
  0x99   :  { %73 = vst.msk [vmem:[%s194_s4] sm:$0x1] %vm72_vm2, %v70_v35 }
  0xb7   :  { %s110_s0 = spop %109 }
  0xb8   :  { %v32_v20 = vstv %s110_s0 }
  0xb9   :  { %116 = vrsqrt.f32 %v32_v20  ;;  %vm40_vm3 = vcmp.eq.f32.partialorder %v32_v20, inf  ;;  %v43_v39 = vand.u32 2147483648, %v32_v20  ;;  %vm42_vm4 = vcmp.eq.f32.partialorder %v32_v20, 0.0 }
  0xbf   :  { %v117_v26 = vpop.eup %116 }
  0xc0   :  { %v34_v28 = vmul.f32 %v117_v26, %v32_v20 }
  0xc2   :  { %v35_v31 = vmul.f32 %v117_v26, %v34_v28 }
  0xc4   :  { %v36_v34 = vmul.f32 0.5, %v35_v31 }
  0xc6   :  { %v37_v36 = vsub.f32 1.5, %v36_v34 }
  0xc8   :  { %v38_v37 = vmul.f32 %v117_v26, %v37_v36 }
  0xca   :  { %v39_v38 = vmul.f32 %v38_v37, %v32_v20 }
  0xcc   :  { %v41_v40 = vsel %vm40_vm3, %v32_v20, %v39_v38 }
  0xcd   :  { %v44_v41 = vsel %vm42_vm4, %v43_v39, %v41_v40 }
  0xce   :  { %111 = vpush %v44_v41 }
  0xff   :  { %s112_s10 = spop %111 }
 0x100   :  { %47 = sst [smem:[#allocation2]] %s112_s10 }
 0x101   :  { %94 = dma.smem_to_hbm %s132_s2, 16, %s92_s9, [#allocation3]  }
 0x102   :  { %130 = dma.done.wait [#allocation3], 16  }
 0x103   :  { %131 = vsyncadd [#allocation3], 4294967280 }
 0x104   :  { %107 = sfence }
 0x105   :  { %108 = vsyncpa [#allocation3], 1 }

</bundles_post_ra>
